<compile_context>
chip_gen: v7x
topology: tpu7x:2x2x1
jax: 0.10.0
libtpu: 0.0.40
codegen_flags: <defaults>
</compile_context>

<pallas_src>
import jax
import jax.numpy as jnp
from jax.experimental import pallas as pl
from jax.experimental.pallas import tpu as pltpu


def teacher_loss_kernel(x_ref, w_ref, b_ref, out_ref):
    """One (batch, pixel-tile) grid step.

    x_ref  : (C, TL)   VMEM tile — channels on sublanes, pixels on lanes
    w_ref  : (C, C)    SMEM teacher 1x1-conv weight (out_ch, in_ch)
    b_ref  : (C,)      SMEM teacher bias
    out_ref: (1, OW)   VMEM lane-dense partial sum of squared error
    """
    C, TL = x_ref.shape
    out_w = out_ref.shape[1]

    x = x_ref[...]                                   # (C, TL)

    # Per-lane accumulator of squared error across the C output channels.
    acc = jnp.zeros((1, TL), jnp.float32)
    # NOTE: unrolled C*C VPU scalar-broadcast FMAs; intended for small C
    # (large-C variants should switch to an MXU matmul path instead).
    for o in range(C):
        g = x[0:1, :] * w_ref[o, 0]                  # scalar (SMEM) * vector
        for c in range(1, C):
            g = g + x[c:c + 1, :] * w_ref[o, c]
        g = g + b_ref[o]                             # teacher(x) row o
        xo = x[o:o + 1, :]
        err = xo - jnp.maximum(xo - g, 0.0)          # x - relu(x - teacher(x))
        acc = acc + err * err

    # Fold TL lanes down to the lane-dense output width (128-aligned slices
    # are whole-vreg selections, pure VPU adds; no cross-lane XLU reduce).
    part = acc[:, 0:out_w]
    for j in range(1, TL // out_w):
        part = part + acc[:, j * out_w:(j + 1) * out_w]
    out_ref[...] = part


def _pick_tile_lanes(hw, c, max_tile_bytes=4 << 20):
    """Largest pixel-tile width that divides hw, is a multiple of 128, and
    keeps the (C, TL) f32 tile under max_tile_bytes (VMEM-safe on v7x even
    with double-buffering)."""
    if hw % 128 != 0:
        return hw                    # single full-row tile; still lane-major
    max_lanes = max(128, (max_tile_bytes // (4 * c)) // 128 * 128)
    best = 128
    cand = 128
    while cand <= min(hw, max_lanes):
        if hw % cand == 0:
            best = cand
        cand += 128
    return best


def teacher_loss(x_nchw, w_conv, b_conv, *, tile_lanes=None):
    """x_nchw: (B, C, H, W) f32; w_conv: (C, C, 1, 1); b_conv: (C,)."""
    B, C, H, W = x_nchw.shape
    HW = H * W

    # Free reshape (row-major view): pixels land on the lane axis, no transpose.
    x3 = x_nchw.reshape(B, C, HW).astype(jnp.float32)
    w2 = w_conv.reshape(C, C).astype(jnp.float32)      # (out_ch, in_ch)
    b1 = b_conv.reshape(C).astype(jnp.float32)

    TL = _pick_tile_lanes(HW, C) if tile_lanes is None else tile_lanes
    assert HW % TL == 0, "pixel-tile width must divide H*W"
    n_t = HW // TL
    out_w = 128 if (TL % 128 == 0) else TL

    partials = pl.pallas_call(
        teacher_loss_kernel,
        out_shape=jax.ShapeDtypeStruct((B, n_t, 1, out_w), jnp.float32),
        grid_spec=pltpu.PrefetchScalarGridSpec(
            num_scalar_prefetch=0,
            grid=(B, n_t),
            in_specs=[
                # x tile: batch squeezed, channels full, pixel window of TL lanes.
                pl.BlockSpec((None, C, TL), lambda b, t: (b, 0, t)),
                # Tiny teacher params live in SMEM (scalar reads, no VMEM streams).
                pl.BlockSpec(memory_space=pltpu.MemorySpace.SMEM),
                pl.BlockSpec(memory_space=pltpu.MemorySpace.SMEM),
            ],
            # One lane-dense partial per grid step -> fully parallel grid.
            out_specs=pl.BlockSpec((None, None, 1, out_w),
                                   lambda b, t: (b, t, 0, 0)),
        ),
        compiler_params=pltpu.CompilerParams(
            dimension_semantics=("parallel", "parallel"),
        ),
    )(x3, w2, b1)

    # Final (tiny) reduction + MSE normalization, then / 2.
    return jnp.sum(partials) / jnp.float32(B * C * HW) / jnp.float32(2.0)


def teacher_loss_ref(x_nchw, w_conv, b_conv):
    """Pure-JAX reference matching the PyTorch forward semantics."""
    B, C, H, W = x_nchw.shape
    x_flat = jnp.transpose(x_nchw, (0, 2, 3, 1)).reshape(-1, C)
    grads = x_flat @ jnp.transpose(w_conv.reshape(C, C)) + b_conv[None, :]
    diff = jnp.maximum(x_flat - grads, 0.0)
    return jnp.mean((x_flat - diff) ** 2) / 2.0


if __name__ == "__main__":
    key = jax.random.PRNGKey(0)
    kx, kw, kb = jax.random.split(key, 3)

    B, C, H, W = 2, 4, 16, 16
    x = jax.random.normal(kx, (B, C, H, W), dtype=jnp.float32)
    # Deterministic synthetic teacher parameters (no checkpoint load).
    w_conv = jax.random.normal(kw, (C, C, 1, 1), dtype=jnp.float32) * 0.1
    b_conv = jax.random.normal(kb, (C,), dtype=jnp.float32) * 0.1

    loss = teacher_loss(x, w_conv, b_conv)
    jax.block_until_ready(loss)

    ref = teacher_loss_ref(x, w_conv, b_conv)
    assert jnp.allclose(loss, ref, rtol=1e-4, atol=1e-6), (loss, ref)

    print("KERNEL_OK")
</pallas_src>

<mosaic_0001>
module attributes {stable_mosaic.version = 11 : i64} {
  func.func @teacher_loss_kernel(%arg0: i32, %arg1: i32, %arg2: memref<1x4x256xf32, #tpu.memory_space<vmem>>, %arg3: memref<4x4xf32, #tpu.memory_space<smem>>, %arg4: memref<4xf32, #tpu.memory_space<smem>>, %arg5: memref<1x1x1x128xf32, #tpu.memory_space<vmem>>) attributes {dimension_semantics = [#tpu.dimension_semantics<parallel>, #tpu.dimension_semantics<parallel>], iteration_bounds = array<i64: 2, 1>, scalar_prefetch = 0 : i64, scratch_operands = 0 : i64, tpu.core_type = #tpu.core_type<tc>, window_params = [{transform_indices = @transform_0, window_bounds = array<i64: 1, 4, 256>}, {transform_indices = @transform_1, window_bounds = array<i64: 4, 4>}, {transform_indices = @transform_2, window_bounds = array<i64: 4>}, {transform_indices = @transform_3, window_bounds = array<i64: 1, 1, 1, 128>}]} {
    %c0 = arith.constant 0 : index
    %c0_0 = arith.constant 0 : index
    %c0_1 = arith.constant 0 : index
    %0 = vector.load %arg2[%c0, %c0_0, %c0_1] : memref<1x4x256xf32, #tpu.memory_space<vmem>>, vector<1x4x256xf32>
    %1 = vector.shape_cast %0 : vector<1x4x256xf32> to vector<4x256xf32>
    %cst = arith.constant 0.000000e+00 : f32
    %2 = vector.broadcast %cst : f32 to vector<1x256xf32>
    %3 = vector.extract_strided_slice %1 {offsets = [0, 0], sizes = [1, 256], strides = [1, 1]} : vector<4x256xf32> to vector<1x256xf32>
    %c0_2 = arith.constant 0 : index
    %c0_3 = arith.constant 0 : index
    %4 = memref.load %arg3[%c0_2, %c0_3] : memref<4x4xf32, #tpu.memory_space<smem>>
    %5 = vector.broadcast %4 : f32 to vector<1x256xf32>
    %6 = arith.mulf %3, %5 : vector<1x256xf32>
    %7 = vector.extract_strided_slice %1 {offsets = [1, 0], sizes = [1, 256], strides = [1, 1]} : vector<4x256xf32> to vector<1x256xf32>
    %c0_4 = arith.constant 0 : index
    %c1 = arith.constant 1 : index
    %8 = memref.load %arg3[%c0_4, %c1] : memref<4x4xf32, #tpu.memory_space<smem>>
    %9 = vector.broadcast %8 : f32 to vector<1x256xf32>
    %10 = arith.mulf %7, %9 : vector<1x256xf32>
    %11 = arith.addf %6, %10 : vector<1x256xf32>
    %12 = vector.extract_strided_slice %1 {offsets = [2, 0], sizes = [1, 256], strides = [1, 1]} : vector<4x256xf32> to vector<1x256xf32>
    %c0_5 = arith.constant 0 : index
    %c2 = arith.constant 2 : index
    %13 = memref.load %arg3[%c0_5, %c2] : memref<4x4xf32, #tpu.memory_space<smem>>
    %14 = vector.broadcast %13 : f32 to vector<1x256xf32>
    %15 = arith.mulf %12, %14 : vector<1x256xf32>
    %16 = arith.addf %11, %15 : vector<1x256xf32>
    %17 = vector.extract_strided_slice %1 {offsets = [3, 0], sizes = [1, 256], strides = [1, 1]} : vector<4x256xf32> to vector<1x256xf32>
    %c0_6 = arith.constant 0 : index
    %c3 = arith.constant 3 : index
    %18 = memref.load %arg3[%c0_6, %c3] : memref<4x4xf32, #tpu.memory_space<smem>>
    %19 = vector.broadcast %18 : f32 to vector<1x256xf32>
    %20 = arith.mulf %17, %19 : vector<1x256xf32>
    %21 = arith.addf %16, %20 : vector<1x256xf32>
    %c0_7 = arith.constant 0 : index
    %22 = memref.load %arg4[%c0_7] : memref<4xf32, #tpu.memory_space<smem>>
    %23 = vector.broadcast %22 : f32 to vector<1x256xf32>
    %24 = arith.addf %21, %23 : vector<1x256xf32>
    %25 = vector.extract_strided_slice %1 {offsets = [0, 0], sizes = [1, 256], strides = [1, 1]} : vector<4x256xf32> to vector<1x256xf32>
    %26 = arith.subf %25, %24 : vector<1x256xf32>
    %cst_8 = arith.constant 0.000000e+00 : f32
    %27 = vector.broadcast %cst_8 : f32 to vector<1x256xf32>
    %28 = arith.maximumf %26, %27 : vector<1x256xf32>
    %29 = arith.subf %25, %28 : vector<1x256xf32>
    %30 = arith.mulf %29, %29 : vector<1x256xf32>
    %31 = arith.addf %2, %30 : vector<1x256xf32>
    %32 = vector.extract_strided_slice %1 {offsets = [0, 0], sizes = [1, 256], strides = [1, 1]} : vector<4x256xf32> to vector<1x256xf32>
    %c1_9 = arith.constant 1 : index
    %c0_10 = arith.constant 0 : index
    %33 = memref.load %arg3[%c1_9, %c0_10] : memref<4x4xf32, #tpu.memory_space<smem>>
    %34 = vector.broadcast %33 : f32 to vector<1x256xf32>
    %35 = arith.mulf %32, %34 : vector<1x256xf32>
    %36 = vector.extract_strided_slice %1 {offsets = [1, 0], sizes = [1, 256], strides = [1, 1]} : vector<4x256xf32> to vector<1x256xf32>
    %c1_11 = arith.constant 1 : index
    %c1_12 = arith.constant 1 : index
    %37 = memref.load %arg3[%c1_11, %c1_12] : memref<4x4xf32, #tpu.memory_space<smem>>
    %38 = vector.broadcast %37 : f32 to vector<1x256xf32>
    %39 = arith.mulf %36, %38 : vector<1x256xf32>
    %40 = arith.addf %35, %39 : vector<1x256xf32>
    %41 = vector.extract_strided_slice %1 {offsets = [2, 0], sizes = [1, 256], strides = [1, 1]} : vector<4x256xf32> to vector<1x256xf32>
    %c1_13 = arith.constant 1 : index
    %c2_14 = arith.constant 2 : index
    %42 = memref.load %arg3[%c1_13, %c2_14] : memref<4x4xf32, #tpu.memory_space<smem>>
    %43 = vector.broadcast %42 : f32 to vector<1x256xf32>
    %44 = arith.mulf %41, %43 : vector<1x256xf32>
    %45 = arith.addf %40, %44 : vector<1x256xf32>
    %46 = vector.extract_strided_slice %1 {offsets = [3, 0], sizes = [1, 256], strides = [1, 1]} : vector<4x256xf32> to vector<1x256xf32>
    %c1_15 = arith.constant 1 : index
    %c3_16 = arith.constant 3 : index
    %47 = memref.load %arg3[%c1_15, %c3_16] : memref<4x4xf32, #tpu.memory_space<smem>>
    %48 = vector.broadcast %47 : f32 to vector<1x256xf32>
    %49 = arith.mulf %46, %48 : vector<1x256xf32>
    %50 = arith.addf %45, %49 : vector<1x256xf32>
    %c1_17 = arith.constant 1 : index
    %51 = memref.load %arg4[%c1_17] : memref<4xf32, #tpu.memory_space<smem>>
    %52 = vector.broadcast %51 : f32 to vector<1x256xf32>
    %53 = arith.addf %50, %52 : vector<1x256xf32>
    %54 = vector.extract_strided_slice %1 {offsets = [1, 0], sizes = [1, 256], strides = [1, 1]} : vector<4x256xf32> to vector<1x256xf32>
    %55 = arith.subf %54, %53 : vector<1x256xf32>
    %cst_18 = arith.constant 0.000000e+00 : f32
    %56 = vector.broadcast %cst_18 : f32 to vector<1x256xf32>
    %57 = arith.maximumf %55, %56 : vector<1x256xf32>
    %58 = arith.subf %54, %57 : vector<1x256xf32>
    %59 = arith.mulf %58, %58 : vector<1x256xf32>
    %60 = arith.addf %31, %59 : vector<1x256xf32>
    %61 = vector.extract_strided_slice %1 {offsets = [0, 0], sizes = [1, 256], strides = [1, 1]} : vector<4x256xf32> to vector<1x256xf32>
    %c2_19 = arith.constant 2 : index
    %c0_20 = arith.constant 0 : index
    %62 = memref.load %arg3[%c2_19, %c0_20] : memref<4x4xf32, #tpu.memory_space<smem>>
    %63 = vector.broadcast %62 : f32 to vector<1x256xf32>
    %64 = arith.mulf %61, %63 : vector<1x256xf32>
    %65 = vector.extract_strided_slice %1 {offsets = [1, 0], sizes = [1, 256], strides = [1, 1]} : vector<4x256xf32> to vector<1x256xf32>
    %c2_21 = arith.constant 2 : index
    %c1_22 = arith.constant 1 : index
    %66 = memref.load %arg3[%c2_21, %c1_22] : memref<4x4xf32, #tpu.memory_space<smem>>
    %67 = vector.broadcast %66 : f32 to vector<1x256xf32>
    %68 = arith.mulf %65, %67 : vector<1x256xf32>
    %69 = arith.addf %64, %68 : vector<1x256xf32>
    %70 = vector.extract_strided_slice %1 {offsets = [2, 0], sizes = [1, 256], strides = [1, 1]} : vector<4x256xf32> to vector<1x256xf32>
    %c2_23 = arith.constant 2 : index
    %c2_24 = arith.constant 2 : index
    %71 = memref.load %arg3[%c2_23, %c2_24] : memref<4x4xf32, #tpu.memory_space<smem>>
    %72 = vector.broadcast %71 : f32 to vector<1x256xf32>
    %73 = arith.mulf %70, %72 : vector<1x256xf32>
    %74 = arith.addf %69, %73 : vector<1x256xf32>
    %75 = vector.extract_strided_slice %1 {offsets = [3, 0], sizes = [1, 256], strides = [1, 1]} : vector<4x256xf32> to vector<1x256xf32>
    %c2_25 = arith.constant 2 : index
    %c3_26 = arith.constant 3 : index
    %76 = memref.load %arg3[%c2_25, %c3_26] : memref<4x4xf32, #tpu.memory_space<smem>>
    %77 = vector.broadcast %76 : f32 to vector<1x256xf32>
    %78 = arith.mulf %75, %77 : vector<1x256xf32>
    %79 = arith.addf %74, %78 : vector<1x256xf32>
    %c2_27 = arith.constant 2 : index
    %80 = memref.load %arg4[%c2_27] : memref<4xf32, #tpu.memory_space<smem>>
    %81 = vector.broadcast %80 : f32 to vector<1x256xf32>
    %82 = arith.addf %79, %81 : vector<1x256xf32>
    %83 = vector.extract_strided_slice %1 {offsets = [2, 0], sizes = [1, 256], strides = [1, 1]} : vector<4x256xf32> to vector<1x256xf32>
    %84 = arith.subf %83, %82 : vector<1x256xf32>
    %cst_28 = arith.constant 0.000000e+00 : f32
    %85 = vector.broadcast %cst_28 : f32 to vector<1x256xf32>
    %86 = arith.maximumf %84, %85 : vector<1x256xf32>
    %87 = arith.subf %83, %86 : vector<1x256xf32>
    %88 = arith.mulf %87, %87 : vector<1x256xf32>
    %89 = arith.addf %60, %88 : vector<1x256xf32>
    %90 = vector.extract_strided_slice %1 {offsets = [0, 0], sizes = [1, 256], strides = [1, 1]} : vector<4x256xf32> to vector<1x256xf32>
    %c3_29 = arith.constant 3 : index
    %c0_30 = arith.constant 0 : index
    %91 = memref.load %arg3[%c3_29, %c0_30] : memref<4x4xf32, #tpu.memory_space<smem>>
    %92 = vector.broadcast %91 : f32 to vector<1x256xf32>
    %93 = arith.mulf %90, %92 : vector<1x256xf32>
    %94 = vector.extract_strided_slice %1 {offsets = [1, 0], sizes = [1, 256], strides = [1, 1]} : vector<4x256xf32> to vector<1x256xf32>
    %c3_31 = arith.constant 3 : index
    %c1_32 = arith.constant 1 : index
    %95 = memref.load %arg3[%c3_31, %c1_32] : memref<4x4xf32, #tpu.memory_space<smem>>
    %96 = vector.broadcast %95 : f32 to vector<1x256xf32>
    %97 = arith.mulf %94, %96 : vector<1x256xf32>
    %98 = arith.addf %93, %97 : vector<1x256xf32>
    %99 = vector.extract_strided_slice %1 {offsets = [2, 0], sizes = [1, 256], strides = [1, 1]} : vector<4x256xf32> to vector<1x256xf32>
    %c3_33 = arith.constant 3 : index
    %c2_34 = arith.constant 2 : index
    %100 = memref.load %arg3[%c3_33, %c2_34] : memref<4x4xf32, #tpu.memory_space<smem>>
    %101 = vector.broadcast %100 : f32 to vector<1x256xf32>
    %102 = arith.mulf %99, %101 : vector<1x256xf32>
    %103 = arith.addf %98, %102 : vector<1x256xf32>
    %104 = vector.extract_strided_slice %1 {offsets = [3, 0], sizes = [1, 256], strides = [1, 1]} : vector<4x256xf32> to vector<1x256xf32>
    %c3_35 = arith.constant 3 : index
    %c3_36 = arith.constant 3 : index
    %105 = memref.load %arg3[%c3_35, %c3_36] : memref<4x4xf32, #tpu.memory_space<smem>>
    %106 = vector.broadcast %105 : f32 to vector<1x256xf32>
    %107 = arith.mulf %104, %106 : vector<1x256xf32>
    %108 = arith.addf %103, %107 : vector<1x256xf32>
    %c3_37 = arith.constant 3 : index
    %109 = memref.load %arg4[%c3_37] : memref<4xf32, #tpu.memory_space<smem>>
    %110 = vector.broadcast %109 : f32 to vector<1x256xf32>
    %111 = arith.addf %108, %110 : vector<1x256xf32>
    %112 = vector.extract_strided_slice %1 {offsets = [3, 0], sizes = [1, 256], strides = [1, 1]} : vector<4x256xf32> to vector<1x256xf32>
    %113 = arith.subf %112, %111 : vector<1x256xf32>
    %cst_38 = arith.constant 0.000000e+00 : f32
    %114 = vector.broadcast %cst_38 : f32 to vector<1x256xf32>
    %115 = arith.maximumf %113, %114 : vector<1x256xf32>
    %116 = arith.subf %112, %115 : vector<1x256xf32>
    %117 = arith.mulf %116, %116 : vector<1x256xf32>
    %118 = arith.addf %89, %117 : vector<1x256xf32>
    %119 = vector.extract_strided_slice %118 {offsets = [0, 0], sizes = [1, 128], strides = [1, 1]} : vector<1x256xf32> to vector<1x128xf32>
    %120 = vector.extract_strided_slice %118 {offsets = [0, 128], sizes = [1, 128], strides = [1, 1]} : vector<1x256xf32> to vector<1x128xf32>
    %121 = arith.addf %119, %120 : vector<1x128xf32>
    %c0_39 = arith.constant 0 : index
    %c0_40 = arith.constant 0 : index
    %c0_41 = arith.constant 0 : index
    %c0_42 = arith.constant 0 : index
    %122 = vector.load %arg5[%c0_39, %c0_40, %c0_41, %c0_42] : memref<1x1x1x128xf32, #tpu.memory_space<vmem>>, vector<1x1x1x128xf32>
    %123 = vector.shape_cast %122 : vector<1x1x1x128xf32> to vector<1x128xf32>
    %124 = vector.shape_cast %121 : vector<1x128xf32> to vector<1x1x1x128xf32>
    tpu.vector_store %arg5[%c0_39, %c0_40, %c0_41, %c0_42], %124 {strides = array<i32>} : memref<1x1x1x128xf32, #tpu.memory_space<vmem>>, vector<1x1x1x128xf32>,
    return
  }
  func.func @transform_0(%arg0: i32, %arg1: i32) -> (i32, i32, i32) {
    %c0_i32 = arith.constant 0 : i32
    %c0_i32_0 = arith.constant 0 : i32
    return %arg0, %c0_i32, %arg1 : i32, i32, i32
  }
  func.func @transform_1(%arg0: i32, %arg1: i32) -> (i32, i32) {
    %c0_i32 = arith.constant 0 : i32
    %c0_i32_0 = arith.constant 0 : i32
    %c0_i32_1 = arith.constant 0 : i32
    return %c0_i32, %c0_i32_0 : i32, i32
  }
  func.func @transform_2(%arg0: i32, %arg1: i32) -> i32 {
    %c0_i32 = arith.constant 0 : i32
    %c0_i32_0 = arith.constant 0 : i32
    return %c0_i32 : i32
  }
  func.func @transform_3(%arg0: i32, %arg1: i32) -> (i32, i32, i32, i32) {
    %c0_i32 = arith.constant 0 : i32
    %c0_i32_0 = arith.constant 0 : i32
    %c0_i32_1 = arith.constant 0 : i32
    return %arg0, %arg1, %c0_i32, %c0_i32_0 : i32, i32, i32, i32
  }
}

</mosaic_0001>

<bundles_post_ra>
// kernel: tpu_custom_call.1
= control target key start
LH: loop header
LB: loop body
LE: loop exit
PB: predicated region body
PF: predicated region fallthrough
CT: control target
= control target key end

     0   :  { %8 = vsyncpa [#allocation3], 0  ;;  %s1109_s0 = inlined_call_operand.hbm [shape: f32[2,4,256], index: 0, kind: input, shape index: {}]   ;;  %s1110_s1 = inlined_call_operand.hbm [shape: f32[4,4], index: 1, kind: input, shape index: {}]   ;;  %s1111_s2 = inlined_call_operand.vmem [shape: f32[4], index: 2, kind: input, shape index: {}]   ;;  %s1112_s3 = inlined_call_operand.hbm [shape: f32[2,1,1,128], index: 3, kind: output, shape index: {}]  }
   0x1   :  { %10 = vsyncpa [#allocation3 + $0x1], 0 }
   0x2   :  { %11 = vsyncpa [#allocation5], 0 }
   0x3   :  { %12 = vsyncpa [#allocation6], 0 }
   0x4   :  { %13 = vsyncpa [#allocation4], 0 }
   0x5   :  { %15 = vsyncpa [#allocation4 + $0x1], 0  ;;  %s820_s12 = smov 0   ;;  %s822_s13 = smov 0  }
   0x6   :  { %s824_s14 = smov 0   ;;  %s826_s15 = smov 0  }
   0x7   :  { %s828_s16 = smov 0   ;;  %s830_s17 = smov 0  }
   0x8 LB: > { %s513_s18 = sadd.s32 4294967295, %s794_s17   ;;  %s514_s19 = sadd.s32 4294967294, %s794_s17   ;;  %s794_s17 = sphi %s830_s17, %s21_s17   ;;  %s790_s16 = sphi %s828_s16, %s1135_s16   ;;  %s786_s15 = sphi %s826_s15, %s1134_s15   ;;  %s782_s14 = sphi %s824_s14, %s1133_s14   ;;  %s778_s13 = sphi %s822_s13, %s1132_s13   ;;  %s774_s12 = sphi %s820_s12, %s1131_s12  }
   0x9   : > { %p55_p0 = scmp.ne.s32.totalorder %s778_s13, %s774_s12  ;;  %p854_p1 = scmp.eq.s32.totalorder %s513_s18, 0 }
   0xa   : > { %p858_p2 = scmp.eq.s32.totalorder %s513_s18, 1  ;;  %p129_p3 = scmp.eq.s32.totalorder %s514_s19, 1 }
   0xb   : > { %s1117_s20 = scalar_select %p854_p1, 1, 0 }
   0xc   : > { %p864_p4 = por %p854_p1, %p55_p0  ;;  %p515_p5 = scmp.ge.s32.totalorder %s794_s17, 1 }
   0xd   : > { %p869_p6 = por %p129_p3, %p55_p0  ;;  %p136_p7 = scmp.lt.s32.totalorder %s794_s17, 3 }
   0xe   : > { %s1119_s22 = scalar_select %p864_p4, 1, 0 }
   0xf   : > { %s1120_s23 = scalar_select %p869_p6, 1, 0 }
  0x10   : > { %p874_p8 = pnand %p515_p5, %p136_p7  ;;  %s158_s27 = sshll.u32 %s1111_s2, 4  ;;  %s159_s27 = int_to_ptr.vmem [resolvable:$true] %s158_s27 }
  0x11   : > { %s33_s29 = sadd.s32 1, %s790_s16  ;;  %s646_s6 = scalar_lea.hbm %s1110_s1, 64 }
  0x12   : > { %s1121_s24 = scalar_select %p874_p8, 1, 0 }
  0x13   : > { %p575_p10 = pneg %p874_p8  ;;  %p891_p12 = scmp.ge.s32.totalorder %s33_s29, 2 }
  0x14   : > { %p647_p13 = scmp.ne.s32.totalorder %s1110_s1, %s646_s6  ;;  %p653_p7 = scmp.lt.u32.totalorder %s646_s6, %s1110_s1 }
  0x15   : > { %p886_p11 = pnand %p575_p10, %p854_p1 }
  0x17   : > { %p648_p0 = pneg %p886_p11 }
  0x19   : > { %p649_p3 = pnand %p648_p0, %p647_p13 }
  0x1b   : > { %p650_p5 = pneg %p649_p3 }
  0x1d   : > { %p655_p10 = pnand %p653_p7, %p650_p5 }
  0x1f   : > { %658 = shalt.err (!%p655_p10)
}
  0x20   : > { %s796_s11 = smov [#allocation7]   ;;  %s659_s25 = scalar_lea.vmem %s159_s27, 16 }
  0x21   : > { %578 = dma.hbm_to_smem (!%p886_p11), %s1110_s1, 64, %s796_s11, [#allocation5]  }
  0x22   : > { %p660_p9 = scmp.ne.s32.totalorder %s159_s27, %s659_s25  ;;  %p667_p4 = scmp.lt.s32.totalorder %s159_s27, %s159_s27 }
  0x23   : > { %p668_p13 = scmp.lt.s32.totalorder %s659_s25, %s659_s25 }
  0x24   : > { %p662_p6 = pnand %p660_p9, %p648_p0 }
  0x25   : > { %p669_p3 = por %p668_p13, %p667_p4 }
  0x26   : > { %p663_p1 = pneg %p662_p6 }
  0x28   : > { %p670_p8 = pnand %p669_p3, %p663_p1 }
  0x2a   : > { %673 = shalt.err (!%p670_p8)
}
  0x2b   : > { %s797_s26 = smov [#allocation8]   ;;  %s1137_s29 = smov (%p891_p12, %s33_s29), 0 }
  0x2c   : > { %581 = dma.vmem_to_smem (!%p886_p11), %s159_s27, 16, %s797_s26, [#allocation6]  }
  0x2d   : > { %s42_s4 = sadd.s32 1, %s782_s14  ;;  %p49_p1 = scmp.ne.s32.totalorder %s782_s14, %s778_s13 }
  0x2e   : > { %s37_s5 = ssub.s32 %s790_s16, %s1137_s29  ;;  %p50_p4 = scmp.eq.s32.totalorder %s794_s17, 0 }
  0x2f   : > { %p40_p6 = scmp.eq.s32.totalorder %s37_s5, 0  ;;  %p925_p8 = por %p858_p2, %p49_p1 }
  0x30   : > { %p51_p9 = por %p50_p4, %p49_p1  ;;  %p592_p0 = scmp.lt.s32.totalorder %s794_s17, 2 }
  0x31   : > { %s931_s6 = scalar_select %p40_p6, %s782_s14, %s42_s4  }
  0x32   : > { %s169_s7 = sand.u32 1, %s782_s14   ;;  %s562_s27 = sshll.u32 %s790_s16, 7 }
  0x33   : > { %s519_s30 = sshll.u32 %s169_s7, 3  ;;  %s938_s10 = scalar_lea.hbm %s1109_s0, %s562_s27 }
  0x34   : > { %s173_s21 = scalar_lea.vmem [#allocation2], %s519_s30  ;;  %p940_p2 = pnand %p592_p0, %p51_p9 }
  0x35   : > { %s183_s11 = sshll.u32 %s173_s21, 4  ;;  %s170_s19 = scalar_lea.sflag [#allocation3], %s169_s7  ;;  %s944_s11 = int_to_ptr.vmem [resolvable:$true] %s183_s11 }
  0x36   : > { %s674_s25 = scalar_lea.hbm %s938_s10, 128  ;;  %p676_p12 = pneg %p940_p2 }
  0x37   : > { %p675_p11 = scmp.ne.s32.totalorder %s938_s10, %s674_s25  ;;  %s679_s5 = scalar_lea.hbm %s1109_s0, 256 }
  0x38   : > { %p680_p10 = scmp.lt.u32.totalorder %s938_s10, %s1109_s0  ;;  %p681_p13 = scmp.lt.u32.totalorder %s679_s5, %s674_s25 }
  0x39   : > { %p677_p5 = pnand %p676_p12, %p675_p11  ;;  %p683_p1 = scmp.lt.u32.totalorder %s674_s25, %s938_s10 }
  0x3a   : > { %p682_p3 = por %p681_p13, %p680_p10 }
  0x3b   : > { %p678_p7 = pneg %p677_p5 }
  0x3c   : > { %p684_p4 = por %p683_p1, %p682_p3 }
  0x3e   : > { %p685_p6 = pnand %p684_p4, %p678_p7 }
  0x40   : > { %688 = shalt.err (!%p685_p6)
}
  0x41   : > { %s689_s7 = scalar_lea.vmem %s944_s11, 128  ;;  %s798_s8 = smov [#allocation2]  }
  0x42   : > { %p690_p9 = scmp.ne.s32.totalorder %s944_s11, %s689_s7  ;;  %s694_s9 = sshll.u32 %s798_s8, 4  ;;  %s695_s9 = int_to_ptr.vmem [resolvable:$false] %s694_s9 }
  0x43   : > { %s696_s21 = scalar_lea.vmem %s695_s9, 256  ;;  %p697_p5 = scmp.lt.s32.totalorder %s944_s11, %s695_s9 }
  0x44   : > { %p692_p0 = pnand %p690_p9, %p676_p12  ;;  %p698_p10 = scmp.lt.s32.totalorder %s696_s21, %s689_s7 }
  0x46   : > { %p693_p11 = pneg %p692_p0  ;;  %p699_p13 = por %p698_p10, %p697_p5 }
  0x48   : > { %p700_p3 = pnand %p699_p13, %p693_p11 }
  0x4a   : > { %703 = shalt.err (!%p700_p3)
}
  0x4b   : > { %585 = dma.hbm_to_vmem [thread:$0]  (!%p940_p2), %s938_s10, 128, %s944_s11, %s170_s19  }
  0x4c   : > { %p1126_p7 = scmp.ne.s32.totalorder %s1121_s24, 0 }
  0x4d   : > { %s974_s25 = sand.u32 (!%p1126_p7), 1, %s778_s13   ;;  %p1127_p12 = scmp.ne.s32.totalorder (!%p1126_p7), %s1119_s22, 0 }
  0x4e   : > { %192 = sbr.rel (%p1126_p7) target bundleno = 155 (0x9b), region = 32  ;;  %s523_s26 = sshll.u32 (!%p1126_p7), %s974_s25, 3 }
  0x4f   : > { %s195_s4 = scalar_lea.sflag (!%p1126_p7), [#allocation3], %s974_s25  ;;  %s198_s5 = scalar_lea.vmem (!%p1126_p7), [#allocation2], %s523_s26 }
  0x55   : > { %757 = dma.done.wait (%p1127_p12), %s195_s4, 128  }
  0x56   : > { %759 = vsyncadd (%p1127_p12), %s195_s4, 4294967168  ;;  %p1128_p1 = scmp.ne.s32.totalorder %s1117_s20, 0 }
  0x58   : > { %761 = dma.done.wait (%p1128_p1), [#allocation5], 64  }
  0x59   : > { %763 = vsyncadd (%p1128_p1), [#allocation5], 4294967232 }
  0x5a   : > { %765 = dma.done.wait (%p1128_p1), [#allocation6], 16  }
  0x5b   : > { %767 = vsyncadd (%p1128_p1), [#allocation6], 4294967280 }
  0x5c   : > { %211 = sfence }
  0x5d   : > { %s231_s24 = sld [smem:[#allocation7]]  ;;  %s526_s10 = sld [smem:[#allocation7 + $0x1]]  ;;  %v1002_v1 = vld [vmem:[%s198_s5] sm:$0xff] }
  0x5e   : > { %s528_s11 = sld [smem:[#allocation7 + $0x2]]  ;;  %s530_s18 = sld [smem:[#allocation7 + $0x3]] }
  0x5f   : > { %s990_s19 = sld [smem:[#allocation8]]  ;;  %s533_s27 = sld [smem:[#allocation7 + $0x81]] }
  0x60   : > { %s532_s22 = sld [smem:[#allocation7 + $0x80]]  ;;  %s992_s30 = sld [smem:[#allocation7 + $0x82]] }
  0x61   : > { %s994_s7 = sld [smem:[#allocation7 + $0x83]]  ;;  %s996_s8 = sld [smem:[#allocation7 + $0x100]] }
  0x62   : > { %s998_s9 = sld [smem:[#allocation7 + $0x101]]  ;;  %s1000_s20 = sld [smem:[#allocation7 + $0x102]] }
  0x63   : > { %v232_v0 = vstv %s231_s24  ;;  %v235_v2 = vstv %s526_s10  ;;  %s1004_s21 = sld [smem:[#allocation7 + $0x103]]  ;;  %s1009_s26 = sld [smem:[#allocation8 + $0x1]] }
  0x64   : > { %v243_v3 = vstv %s528_s11  ;;  %v233_v4 = vmul.f32 %v232_v0, %v1002_v1  ;;  %v236_v5 = vmul.f32 %v235_v2, %v1002_v1  ;;  %v251_v7 = vstv %s530_s18  ;;  %s1011_s4 = sld [smem:[#allocation7 + $0x180]]  ;;  %s1016_s5 = sld [smem:[#allocation7 + $0x181]] }
  0x65   : > { %v244_v6 = vmul.f32 %v243_v3, %v1002_v1  ;;  %v252_v8 = vmul.f32 %v251_v7, %v1002_v1  ;;  %v270_v10 = vstv %s533_s27  ;;  %s1018_s24 = sld [smem:[#allocation7 + $0x182]]  ;;  %v259_v16 = vstv %s990_s19  ;;  %s1023_s10 = sld [smem:[#allocation7 + $0x183]] }
  0x66   : > { %v267_v9 = vstv %s532_s22  ;;  %v527_v11 = vrot.slane %v236_v5, 9  ;;  %v271_v14 = vmul.f32 %v270_v10, %v1002_v1  ;;  %v278_v17 = vstv %s992_s30  ;;  %s1031_s11 = sld [smem:[#allocation8 + $0x2]]  ;;  %s557_s18 = sld [smem:[#allocation8 + $0x3]] }
  0x67   : > { %v529_v12 = vrot.slane %v244_v6, 10  ;;  %v268_v13 = vmul.f32 %v267_v9, %v1002_v1  ;;  %v531_v15 = vrot.slane %v252_v8, 11  ;;  %v286_v18 = vstv %s994_s7  ;;  %s228_s19 = scalar_lea.vmem [#allocation9], %s974_s25  ;;  %s559_s27 = sshll.u32 %s786_s15, 4 }
  0x68   : > { %v241_v19 = vadd.f32 %v527_v11, %v233_v4  ;;  %v534_v20 = vrot.slane %v271_v14, 9  ;;  %v279_v21 = vmul.f32 %v278_v17, %v1002_v1  ;;  %v287_v22 = vmul.f32 %v286_v18, %v1002_v1  ;;  %s411_s22 = sshll.u32 %s228_s19, 4  ;;  %s799_s15 = smov [#allocation9]   ;;  %s1057_s22 = int_to_ptr.vmem [resolvable:$true] %s411_s22 }
  0x69   : > { %v309_v23 = vstv %s996_s8  ;;  %v312_v24 = vstv %s998_s9  ;;  %v320_v25 = vstv %s1000_s20  ;;  %v328_v26 = vstv %s1004_s21  ;;  %s1062_s8 = scalar_lea.hbm %s1112_s3, %s559_s27  ;;  %s398_s9 = scalar_lea.sflag [#allocation4], %s974_s25 }
  0x6a   : > { %v249_v27 = vadd.f32 %v529_v12, %v241_v19  ;;  %v276_v28 = vadd.f32 %v534_v20, %v268_v13  ;;  %v536_v29 = vrot.slane %v279_v21, 10  ;;  %v538_v30 = vrot.slane %v287_v22, 11  ;;  %s704_s20 = scalar_lea.vmem %s1057_s22, 16  ;;  %s708_s21 = sshll.u32 %s799_s15, 4  ;;  %s709_s21 = int_to_ptr.vmem [resolvable:$false] %s708_s21 }
  0x6b   : > { %v310_v31 = vmul.f32 %v309_v23, %v1002_v1  ;;  %v313_v32 = vmul.f32 %v312_v24, %v1002_v1  ;;  %v321_v33 = vmul.f32 %v320_v25, %v1002_v1  ;;  %v329_v34 = vmul.f32 %v328_v26, %v1002_v1  ;;  %p705_p2 = scmp.ne.s32.totalorder %s1057_s22, %s704_s20  ;;  %p711_p9 = scmp.lt.s32.totalorder %s1057_s22, %s709_s21 }
  0x6c   : > { %v257_v35 = vadd.f32 %v531_v15, %v249_v27  ;;  %v284_v36 = vadd.f32 %v536_v29, %v276_v28  ;;  %v294_v37 = vstv %s1009_s26  ;;  %v351_v38 = vstv %s1011_s4  ;;  %s710_s26 = scalar_lea.vmem %s709_s21, 32 }
  0x6d   : > { %v543_v39 = vrot.slane %v313_v32, 9  ;;  %v545_v40 = vrot.slane %v321_v33, 10  ;;  %v547_v41 = vrot.slane %v329_v34, 11  ;;  %v352_v42 = vmul.f32 %v351_v38, %v1002_v1  ;;  %p706_p4 = pnand %p705_p2, %p925_p8  ;;  %p712_p0 = scmp.lt.s32.totalorder %s710_s26, %s704_s20 }
  0x6e   : > { %v260_v43 = vadd.f32 %v259_v16, %v257_v35  ;;  %v292_v44 = vadd.f32 %v538_v30, %v284_v36  ;;  %v354_v45 = vstv %s1016_s5  ;;  %v362_v46 = vstv %s1018_s24 }
  0x6f   : > { %v318_v47 = vadd.f32 %v543_v39, %v310_v31  ;;  %v355_v48 = vmul.f32 %v354_v45, %v1002_v1  ;;  %v363_v49 = vmul.f32 %v362_v46, %v1002_v1  ;;  %v370_v50 = vstv %s1023_s10  ;;  %p707_p6 = pneg %p706_p4  ;;  %p713_p11 = por %p712_p0, %p711_p9 }
  0x70   : > { %v261_v51 = vsub.f32 %v1002_v1, %v260_v43  ;;  %v295_v52 = vadd.f32 %v294_v37, %v292_v44  ;;  %v371_v53 = vmul.f32 %v370_v50, %v1002_v1  ;;  %v336_v58 = vstv %s1031_s11 }
  0x71   : > { %v326_v54 = vadd.f32 %v545_v40, %v318_v47  ;;  %v552_v55 = vrot.slane %v355_v48, 9  ;;  %v554_v56 = vrot.slane %v363_v49, 10  ;;  %v378_v4 = vstv %s557_s18  ;;  %p714_p5 = pnand %p713_p11, %p707_p6 }
  0x72   : > { %v297_v57 = vrot.slane %v295_v52, 7  ;;  %v262_v59 = vmax.f32 %v261_v51, 0.0  ;;  %v556_v62 = vrot.slane %v371_v53, 11 }
  0x73   : > { %v334_v60 = vadd.f32 %v547_v41, %v326_v54  ;;  %v360_v61 = vadd.f32 %v552_v55, %v352_v42 }
  0x74   : > { %v299_v63 = vsub.f32 %v1002_v1, %v297_v57  ;;  %v263_v5 = vsub.f32 %v1002_v1, %v262_v59 }
  0x75   : > { %v337_v0 = vadd.f32 %v336_v58, %v334_v60  ;;  %v368_v2 = vadd.f32 %v554_v56, %v360_v61 }
  0x76   : > { %v300_v3 = vmax.f32 %v299_v63, 0.0  ;;  %v264_v12 = vmul.f32 %v263_v5, %v263_v5 }
  0x77   : > { %v339_v6 = vrot.slane %v337_v0, 6  ;;  %v376_v7 = vadd.f32 %v556_v62, %v368_v2 }
  0x78   : > { %v301_v8 = vsub.f32 %v1002_v1, %v300_v3 }
  0x79   : > { %v341_v9 = vsub.f32 %v1002_v1, %v339_v6  ;;  %v379_v10 = vadd.f32 %v378_v4, %v376_v7 }
  0x7a   : > { %v302_v11 = vmul.f32 %v301_v8, %v301_v8 }
  0x7b   : > { %v342_v13 = vmax.f32 %v341_v9, 0.0  ;;  %v381_v14 = vrot.slane %v379_v10, 5 }
  0x7c   : > { %v540_v15 = vrot.slane %v302_v11, 9 }
  0x7d   : > { %v343_v16 = vsub.f32 %v1002_v1, %v342_v13  ;;  %v383_v17 = vsub.f32 %v1002_v1, %v381_v14 }
  0x7e   : > { %v307_v18 = vadd.f32 %v540_v15, %v264_v12 }
  0x7f   : > { %v344_v19 = vmul.f32 %v343_v16, %v343_v16  ;;  %v384_v20 = vmax.f32 %v383_v17, 0.0 }
  0x81   : > { %v549_v21 = vrot.slane %v344_v19, 10  ;;  %v385_v22 = vsub.f32 %v1002_v1, %v384_v20 }
  0x83   : > { %v349_v23 = vadd.f32 %v549_v21, %v307_v18  ;;  %v386_v24 = vmul.f32 %v385_v22, %v385_v22 }
  0x85   : > { %v558_v25 = vrot.slane %v386_v24, 11 }
  0x87   : > { %v391_v26 = vadd.f32 %v558_v25, %v349_v23 }
  0x89   : > { %v393_v27 = vrot.slane %v391_v26, 4 }
  0x8b   : > { %v395_v28 = vadd.f32 %v393_v27, %v391_v26 }
  0x8d   : > { %396 = vst [vmem:[%s228_s19] sm:$0x1] %v395_v28 }
  0x8e   : > { %717 = shalt.err (!%p714_p5)
}
  0x8f   : > { %s718_s25 = scalar_lea.hbm %s1062_s8, 16  ;;  %s722_s24 = scalar_lea.hbm %s1112_s3, 32 }
  0x90   : > { %p719_p10 = scmp.ne.s32.totalorder %s1062_s8, %s718_s25  ;;  %p723_p7 = scmp.lt.u32.totalorder %s1062_s8, %s1112_s3 }
  0x91   : > { %p724_p12 = scmp.lt.u32.totalorder %s722_s24, %s718_s25  ;;  %p726_p2 = scmp.lt.u32.totalorder %s718_s25, %s1062_s8 }
  0x92   : > { %p720_p13 = pnand %p719_p10, %p925_p8 }
  0x93   : > { %p725_p1 = por %p724_p12, %p723_p7 }
  0x94   : > { %p721_p3 = pneg %p720_p13 }
  0x95   : > { %p727_p4 = por %p726_p2, %p725_p1 }
  0x97   : > { %p728_p6 = pnand %p727_p4, %p721_p3 }
  0x99   : > { %731 = shalt.err (!%p728_p6)
}
  0x9a   : > { %573 = dma.vmem_to_hbm [thread:$0]  (%p925_p8), %s1057_s22, 16, %s1062_s8, %s398_s9  }
  0x9b PF: > { %s423_s18 = sand.u32 1, %s774_s12   ;;  %p1129_p9 = scmp.ne.s32.totalorder %s1120_s23, 0 }
  0x9c   : > { %p1130_p0 = scmp.ge.s32.totalorder %s794_s17, 2  ;;  %s424_s19 = scalar_lea.sflag [#allocation4], %s423_s18 }
  0x9e   : > { %p587_p11 = pnand %p1130_p0, %p1129_p9 }
  0xa0   : > { %769 = dma.done.wait (!%p587_p11), %s424_s19, 16  }
  0xa1   : > { %771 = vsyncadd (!%p587_p11), %s424_s19, 4294967280  ;;  %s21_s17 = sadd.s32 1, %s794_s17   ;;  %s1131_s12 = smov %s778_s13 }
  0xa2   : > { %p18_p5 = scmp.ge.s32.totalorder %s21_s17, 4   ;;  %s1132_s13 = smov %s782_s14 }
  0xa3   : > { %s1133_s14 = smov %s931_s6  ;;  %s1134_s15 = smov %s790_s16 }
  0xa4   : > { %s1135_s16 = smov %s1137_s29  ;;  %20 = sbr.rel (!%p18_p5) target bundleno = 8 (0x8), region = 87 }
  0xab   :  { %428 = vsyncpa [#allocation3], 1 }
  0xac   :  { %430 = vsyncpa [#allocation3 + $0x1], 1 }
  0xad   :  { %431 = vsyncpa [#allocation4], 1 }
  0xae   :  { %433 = vsyncpa [#allocation4 + $0x1], 1 }
  0xaf   :  { %434 = vsyncpa [#allocation5], 1 }
  0xb0   :  { %436 = vsyncpa [#allocation5 + $0x1], 1 }
  0xb1   :  { %437 = vsyncpa [#allocation6], 1 }
  0xb2   :  { %439 = vsyncpa [#allocation6 + $0x1], 1 }

</bundles_post_ra>
